<compile_context>
chip_gen: v7x
topology: tpu7x:2x2x1
jax: 0.10.0
libtpu: 0.0.40
codegen_flags: <defaults>
</compile_context>

<pallas_src>
import jax
import jax.numpy as jnp
from jax import lax
from jax.experimental import pallas as pl
from jax.experimental.pallas import tpu as pltpu


def _round_up(x, m):
    return (x + m - 1) // m * m


def _vmem_budget_bytes():
    """Generation-aware VMEM budget with headroom below physical capacity."""
    cap = 64 * 1024 * 1024                      # conservative default (v7x physical VMEM)
    try:
        cap = int(pltpu.get_tpu_info().vmem_capacity_bytes)
    except Exception:                           # noqa: BLE001 - best-effort query
        pass
    return (cap * 3) // 4                       # ~48 MiB on v7x, ~96 MiB on v5e/v6e


def _per_step_vmem_bytes(tm, K, Op):
    # double-buffered P tile (bf16) + W (bf16, resident) + bias (f32) + out tile (f32)
    return 2 * (tm * K * 2) + 2 * (K * Op * 2) + 2 * (Op * 4) + 2 * (tm * Op * 4)


def _pick_tm(M, K, Op, budget):
    """Pick the M tile first; the caller pads Mp up to a multiple of it."""
    m_aligned = _round_up(M, 128)
    headroom = 4 << 20
    tm = 128
    for cand in (2048, 1024, 512, 256, 128):
        if _per_step_vmem_bytes(cand, K, Op) + headroom <= budget:
            tm = cand
            break
    tm = min(tm, m_aligned)
    # Prefer >= 2 balanced M tiles when M is big enough (v7x has 2 TensorCores/chip).
    if m_aligned >= 512 and m_aligned // tm < 2:
        tm = max(256, _round_up((m_aligned + 1) // 2, 128))
    return tm


# ---------------------------------------------------------------------------
# Pallas kernel: one (tm, Op) output tile of ReLU(P @ W + bias), W/bias resident
# ---------------------------------------------------------------------------
def _repunit_kernel(p_ref, w_ref, b_ref, o_ref):
    acc = jnp.dot(p_ref[...], w_ref[...], preferred_element_type=jnp.float32)
    acc = acc + b_ref[...]                      # (1, Op) broadcasts over tm rows
    # TODO(synk): RepUnit's source is not in the prompt; ReLU nonlinearity assumed
    # (standard RepVGG-style block). Remove jnp.maximum if the real RepUnit has none.
    o_ref[...] = jnp.maximum(acc, 0.0).astype(o_ref.dtype)


def _repunit_matmul(p, w, bias2d, *, tm, vmem_limit):
    Mp, K = p.shape
    _, Op = w.shape
    grid = (Mp // tm,)

    cost = pl.CostEstimate(
        flops=2 * Mp * K * Op,
        transcendentals=0,
        bytes_accessed=p.size * 2 + w.size * 2 + bias2d.size * 4 + Mp * Op * 4,
    )

    return pl.pallas_call(
        _repunit_kernel,
        out_shape=jax.ShapeDtypeStruct((Mp, Op), jnp.float32),
        grid_spec=pltpu.PrefetchScalarGridSpec(
            num_scalar_prefetch=0,
            grid=grid,
            in_specs=[
                pl.BlockSpec((tm, K), lambda i: (i, 0)),   # im2col rows, streamed over M
                pl.BlockSpec((K, Op), lambda i: (0, 0)),   # folded weights, VMEM-resident
                pl.BlockSpec((1, Op), lambda i: (0, 0)),   # bias, VMEM-resident
            ],
            out_specs=pl.BlockSpec((tm, Op), lambda i: (i, 0)),
        ),
        compiler_params=pltpu.CompilerParams(
            dimension_semantics=("parallel",),             # v7x: shard M over 2 TCs
            vmem_limit_bytes=vmem_limit,
        ),
        cost_estimate=cost,
    )(p, w, bias2d)


# ---------------------------------------------------------------------------
# Parameter construction (deterministic, synthetic)
# ---------------------------------------------------------------------------
def make_params(key, in_dim, out_dim):
    k1, k2, k3, k4, k5, k6 = jax.random.split(key, 6)
    return {
        # conv branches (bias=False, RepVGG-style)
        "w3": 0.1 * jax.random.normal(k1, (out_dim, in_dim, 3, 3), jnp.float32),
        "w1": 0.1 * jax.random.normal(k2, (out_dim, in_dim, 1, 1), jnp.float32),
        # BN for 3x3 branch (eval-mode running stats)
        "g3": 1.0 + 0.1 * jax.random.normal(k3, (out_dim,), jnp.float32),
        "b3": 0.1 * jax.random.normal(k4, (out_dim,), jnp.float32),
        "m3": jnp.zeros((out_dim,), jnp.float32),
        "v3": jnp.ones((out_dim,), jnp.float32),
        # BN for 1x1 branch
        "g1": 1.0 + 0.1 * jax.random.normal(k5, (out_dim,), jnp.float32),
        "b1": 0.1 * jax.random.normal(k6, (out_dim,), jnp.float32),
        "m1": jnp.zeros((out_dim,), jnp.float32),
        "v1": jnp.ones((out_dim,), jnp.float32),
        # self.norm = BatchNorm2d(in_dim): its output is discarded in forward();
        # eval-mode BN has no side effects, so no parameters are needed here.
        # TODO(synk): training-mode running-stat updates of self.norm are not reproduced.
    }


def _fold_bn(w, gamma, beta, mean, var, eps=1e-5):
    """Fold eval-mode BatchNorm into a bias-free conv. Exact in eval mode."""
    scale = gamma / jnp.sqrt(var + eps)            # (O,)
    w_f = w * scale[:, None, None, None]           # (O, C, KH, KW)
    b_f = beta - mean * scale                      # (O,)
    return w_f, b_f


# ---------------------------------------------------------------------------
# Wrapper: NCHW -> NHWC bf16 im2col -> Pallas kernel -> NCHW
# ---------------------------------------------------------------------------
def downstream_forward(params, x):
    """x: float32 NCHW.  Returns float32 NCHW with spatial dims halved."""
    N, C, H, W = x.shape
    O = params["w3"].shape[0]
    stride, pad = 2, 1
    OH = (H + 2 * pad - 3) // stride + 1
    OW = (W + 2 * pad - 3) // stride + 1
    M = N * OH * OW
    K = C * 9                                       # NOT padded to 128

    # --- fold eval-mode BN into each branch (exact) ---
    w3f, b3f = _fold_bn(params["w3"], params["g3"], params["b3"],
                        params["m3"], params["v3"])
    w1f, b1f = _fold_bn(params["w1"], params["g1"], params["b1"],
                        params["m1"], params["v1"])

    # --- exact RepVGG reparam: fold the 1x1 branch into the 3x3 center tap ---
    w_fused = w3f.at[:, :, 1, 1].add(w1f[:, :, 0, 0])      # (O, C, 3, 3)
    bias = b3f + b1f                                        # (O,)

    # --- NHWC bf16 im2col (3x3 / stride 2 / pad 1); no 5-D transpose afterwards ---
    x_nhwc = jnp.transpose(x.astype(jnp.bfloat16), (0, 2, 3, 1))     # (N, H, W, C)
    xp = jnp.pad(x_nhwc, ((0, 0), (pad, pad), (pad, pad), (0, 0)))
    patches = []
    for ki in range(3):
        for kj in range(3):
            patches.append(xp[:, ki::stride, kj::stride, :][:, :OH, :OW, :])
    p3 = jnp.stack(patches, axis=-1)                        # (N, OH, OW, C, 9)
    p3 = p3.reshape(M, K)                                   # contiguous, column = c*9 + tap

    # --- weight matrix matching the im2col column order (C-major, tap-minor) ---
    w_mat = w_fused.reshape(O, K).T.astype(jnp.bfloat16)    # (K, O)

    # --- tiling: pick tm from the per-chip VMEM budget, then pad Mp/Op to tiles ---
    Op = _round_up(O, 128)                                  # lane-dense output
    budget = _vmem_budget_bytes()
    tm = _pick_tm(M, K, Op, budget)
    Mp = _round_up(M, tm)

    p_pad = jnp.pad(p3, ((0, Mp - M), (0, 0)))              # M pad only; K untouched
    w_pad = jnp.pad(w_mat, ((0, 0), (0, Op - O)))
    b_pad = jnp.pad(bias, (0, Op - O)).reshape(1, Op).astype(jnp.float32)

    vmem_limit = int(min(budget,
                         max(_per_step_vmem_bytes(tm, K, Op) + (8 << 20), 32 << 20)))

    # --- Pallas fused matmul + bias + ReLU (bf16 in, f32 accumulate) ---
    out_flat = _repunit_matmul(p_pad, w_pad, b_pad, tm=tm, vmem_limit=vmem_limit)

    out = out_flat[:M, :O].reshape(N, OH, OW, O)            # NHWC f32
    # TODO(synk): an NHWC/bf16-tolerant consumer could skip this transpose and take the
    # kernel output directly (saves one full HBM round trip); kept for PyTorch parity.
    return jnp.transpose(out, (0, 3, 1, 2))                 # NCHW


# ---------------------------------------------------------------------------
if __name__ == "__main__":
    key = jax.random.PRNGKey(0)
    kx, kp = jax.random.split(key)

    in_dim, out_dim = 4, 8
    x = jax.random.normal(kx, (2, in_dim, 16, 16), jnp.float32)     # NCHW
    params = make_params(kp, in_dim, out_dim)

    y = jax.jit(downstream_forward)(params, x)
    jax.block_until_ready(y)

    # f32 XLA-conv reference for a loose (bf16-tolerance) sanity check
    w3f, b3f = _fold_bn(params["w3"], params["g3"], params["b3"],
                        params["m3"], params["v3"])
    w1f, b1f = _fold_bn(params["w1"], params["g1"], params["b1"],
                        params["m1"], params["v1"])
    y3 = lax.conv_general_dilated(x, w3f, (2, 2), ((1, 1), (1, 1)),
                                  dimension_numbers=("NCHW", "OIHW", "NCHW"))
    y1 = lax.conv_general_dilated(x, w1f, (2, 2), ((0, 0), (0, 0)),
                                  dimension_numbers=("NCHW", "OIHW", "NCHW"))
    y_ref = jnp.maximum(y3 + y1 + (b3f + b1f)[None, :, None, None], 0.0)

    assert y.shape == (2, out_dim, 8, 8), y.shape
    assert bool(jnp.all(jnp.isfinite(y)))
    assert bool(jnp.max(jnp.abs(y - y_ref)) < 5e-2), float(jnp.max(jnp.abs(y - y_ref)))
    print("KERNEL_OK")
</pallas_src>

<mosaic_0001>
module attributes {stable_mosaic.version = 11 : i64} {
  func.func @_repunit_kernel(%arg0: i32, %arg1: memref<128x36xbf16, #tpu.memory_space<vmem>>, %arg2: memref<36x128xbf16, #tpu.memory_space<vmem>>, %arg3: memref<1x128xf32, #tpu.memory_space<vmem>>, %arg4: memref<128x128xf32, #tpu.memory_space<vmem>>) attributes {dimension_semantics = [#tpu.dimension_semantics<parallel>], iteration_bounds = array<i64: 1>, scalar_prefetch = 0 : i64, scratch_operands = 0 : i64, tpu.core_type = #tpu.core_type<tc>, window_params = [{transform_indices = @transform_0, window_bounds = array<i64: 128, 36>}, {pipeline_mode = #tpu.pipeline_mode<synchronous>, transform_indices = @transform_1, window_bounds = array<i64: 36, 128>}, {pipeline_mode = #tpu.pipeline_mode<synchronous>, transform_indices = @transform_2, window_bounds = array<i64: 1, 128>}, {transform_indices = @transform_3, window_bounds = array<i64: 128, 128>}]} {
    %c0 = arith.constant 0 : index
    %c0_0 = arith.constant 0 : index
    %0 = vector.load %arg1[%c0, %c0_0] : memref<128x36xbf16, #tpu.memory_space<vmem>>, vector<128x36xbf16>
    %c0_1 = arith.constant 0 : index
    %c0_2 = arith.constant 0 : index
    %1 = vector.load %arg2[%c0_1, %c0_2] : memref<36x128xbf16, #tpu.memory_space<vmem>>, vector<36x128xbf16>
    %cst = arith.constant dense<0.000000e+00> : vector<128x128xf32>
    %2 = tpu.matmul %0, %1, %cst {dimension_numbers = #tpu.dot_dimension_numbers<[1], [0], [0], [1], [0, 0, 1, 1], [], []>} : vector<128x36xbf16>, vector<36x128xbf16>, vector<128x128xf32> -> vector<128x128xf32>
    %c0_3 = arith.constant 0 : index
    %c0_4 = arith.constant 0 : index
    %3 = vector.load %arg3[%c0_3, %c0_4] : memref<1x128xf32, #tpu.memory_space<vmem>>, vector<1x128xf32>
    %4 = vector.broadcast %3 : vector<1x128xf32> to vector<128x128xf32>
    %5 = arith.addf %2, %4 : vector<128x128xf32>
    %cst_5 = arith.constant 0.000000e+00 : f32
    %6 = vector.broadcast %cst_5 : f32 to vector<128x128xf32>
    %7 = arith.maximumf %5, %6 : vector<128x128xf32>
    %c0_6 = arith.constant 0 : index
    %c0_7 = arith.constant 0 : index
    %8 = vector.load %arg4[%c0_6, %c0_7] : memref<128x128xf32, #tpu.memory_space<vmem>>, vector<128x128xf32>
    tpu.vector_store %arg4[%c0_6, %c0_7], %7 {strides = array<i32>} : memref<128x128xf32, #tpu.memory_space<vmem>>, vector<128x128xf32>,
    return
  }
  func.func @transform_0(%arg0: i32) -> (i32, i32) {
    %c0_i32 = arith.constant 0 : i32
    %c0_i32_0 = arith.constant 0 : i32
    return %arg0, %c0_i32 : i32, i32
  }
  func.func @transform_1(%arg0: i32) -> (i32, i32) {
    %c0_i32 = arith.constant 0 : i32
    %c0_i32_0 = arith.constant 0 : i32
    %c0_i32_1 = arith.constant 0 : i32
    return %c0_i32, %c0_i32_0 : i32, i32
  }
  func.func @transform_2(%arg0: i32) -> (i32, i32) {
    %c0_i32 = arith.constant 0 : i32
    %c0_i32_0 = arith.constant 0 : i32
    %c0_i32_1 = arith.constant 0 : i32
    return %c0_i32, %c0_i32_0 : i32, i32
  }
  func.func @transform_3(%arg0: i32) -> (i32, i32) {
    %c0_i32 = arith.constant 0 : i32
    %c0_i32_0 = arith.constant 0 : i32
    return %arg0, %c0_i32 : i32, i32
  }
}

</mosaic_0001>

<bundles_post_ra>
// kernel: downstream_forward.1
= control target key start
LH: loop header
LB: loop body
LE: loop exit
PB: predicated region body
PF: predicated region fallthrough
CT: control target
= control target key end

     0   :  { %vm98_vm0 = vcmask 293888   ;;  %vm123_vm1 = vcmask 1041408   ;;  %s444_s1 = inlined_call_operand.vmem [shape: bf16[36,128], index: 1, kind: input, shape index: {}]   ;;  %s445_s0 = inlined_call_operand.vmem [shape: bf16[128,36], index: 0, kind: input, shape index: {}]   ;;  %s446_s2 = inlined_call_operand.vmem [shape: f32[1,128], index: 2, kind: input, shape index: {}]   ;;  %s447_s3 = inlined_call_operand.vmem [shape: f32[128,128], index: 3, kind: output, shape index: {}]  }
   0x1   :  { %v321_v0 = vld [vmem:[%s444_s1] sm:$0xff]   ;;  %v322_v1 = vld [vmem:[%s444_s1 + $0x8] sm:$0xff]   ;;  %v323_v2 = vld [vmem:[%s444_s1 + $0x10] ss:$0 sps:$4 sm:$0x33]  }
   0x2   :  { %291 = vmatprep.subr.bf16.mxu0 %v321_v0  ;;  %313 = vmatprep.subr.bf16.mxu1 %v321_v0  ;;  %v324_v3 = vld [vmem:[%s445_s0] sm:$0xff]   ;;  %v125_v5 = vsel %vm123_vm1, %v323_v2, 0  ;;  %v326_v6 = vld [vmem:[%s445_s0 + $0x8] sm:$0xff]   ;;  %v328_v8 = vld [vmem:[%s445_s0 + $0x10] sm:$0xff]  }
   0x3   :  { %292 = vmatpush3.bf16.msra.mxu0 %v321_v0  ;;  %316 = vmatpush3.bf16.msra.mxu1 %v321_v0  ;;  %v325_v4 = vld [vmem:[%s445_s0 + $0x20] sm:$0xff]   ;;  %v327_v7 = vld [vmem:[%s445_s0 + $0x28] sm:$0xff]   ;;  %v329_v9 = vld [vmem:[%s445_s0 + $0x30] sm:$0xff]  }
   0x4   :  { %293 = vmatprep.subr.bf16.mxu0 %v322_v1  ;;  %314 = vmatprep.subr.bf16.mxu1 %v322_v1  ;;  %v330_v10 = vld [vmem:[%s445_s0 + $0x18] sm:$0xff]   ;;  %v260_v12 = vld [vmem:[%s446_s2] ss:$0 sm:$0xff] }
   0x5   :  { %297 = vmatprep.mubr.msk.bf16.mxu0 %vm98_vm0, %v324_v3  ;;  %305 = vmatprep.mubr.msk.bf16.mxu1 %vm98_vm0, %v325_v4  ;;  %v331_v11 = vld [vmem:[%s445_s0 + $0x38] sm:$0xff]  }
   0x7   :  { %294 = vmatpush3.bf16.msra.mxu0 %v322_v1  ;;  %317 = vmatpush3.bf16.msra.mxu1 %v322_v1 }
   0x8   :  { %319 = vmatprep.subr.msk.bf16.mxu0 %vm123_vm1, %v323_v2  ;;  %320 = vmatprep.subr.msk.bf16.mxu1 %vm123_vm1, %v323_v2 }
   0xb   :  { %296 = vmatpush3.bf16.msra.mxu0 %v125_v5  ;;  %318 = vmatpush3.bf16.msra.mxu1 %v125_v5 }
   0xe   :  { %298 = vmatmul.mubr.msk.bf16.vlgmr.msra.gmra.mrb[0].mxu0 %vm98_vm0, %v326_v6  ;;  %306 = vmatmul.mubr.msk.bf16.vlgmr.msra.gmra.mrb[0].mxu1 %vm98_vm0, %v327_v7 }
   0xf   :  { %301 = vmatprep.mubr.msk.bf16.mxu0 %vm98_vm0, %v328_v8  ;;  %309 = vmatprep.mubr.msk.bf16.mxu1 %vm98_vm0, %v329_v9 }
  0x16   :  { %302 = vmatmul.mubr.msk.bf16.gmra.mrb[4].mxu0 %vm98_vm0, %v330_v10  ;;  %310 = vmatmul.mubr.msk.bf16.gmra.mrb[4].mxu1 %vm98_vm0, %v331_v11 }
  0xe1   :  { %v299_v13 = vpop.f32.mrb[0].mxu0  ;;  %v307_v14 = vpop.f32.mrb[0].mxu1 }
  0xe2   :  { %v170_v15 = vadd.f32 %v299_v13, %v260_v12  ;;  %v202_v16 = vadd.f32 %v307_v14, %v260_v12  ;;  %v161_v17 = vpop.f32.mrb[1].mxu0  ;;  %v193_v18 = vpop.f32.mrb[1].mxu1 }
  0xe3   :  { %v162_v19 = vadd.f32 %v260_v12, %v161_v17  ;;  %v194_v20 = vadd.f32 %v260_v12, %v193_v18  ;;  %v300_v21 = vpop.f32.mrb[2].mxu0  ;;  %v308_v22 = vpop.f32.mrb[2].mxu1 }
  0xe4   :  { %v226_v23 = vmax.f32 %v170_v15, 0.0  ;;  %v234_v24 = vmax.f32 %v202_v16, 0.0  ;;  %v173_v25 = vadd.f32 %v300_v21, %v260_v12  ;;  %v205_v26 = vadd.f32 %v308_v22, %v260_v12  ;;  %v164_v27 = vpop.f32.mrb[3].mxu0  ;;  %v196_v28 = vpop.f32.mrb[3].mxu1 }
  0xe5   :  { %v224_v29 = vmax.f32 %v162_v19, 0.0  ;;  %v232_v30 = vmax.f32 %v194_v20, 0.0  ;;  %v165_v31 = vadd.f32 %v260_v12, %v164_v27  ;;  %v197_v32 = vadd.f32 %v260_v12, %v196_v28 }
  0xe6   :  { %242 = vst [vmem:[%s447_s3 + $0x10] sm:$0xff] %v226_v23  ;;  %250 = vst [vmem:[%s447_s3 + $0x50] sm:$0xff] %v234_v24  ;;  %v227_v33 = vmax.f32 %v173_v25, 0.0  ;;  %v235_v34 = vmax.f32 %v205_v26, 0.0 }
  0xe7   :  { %240 = vst [vmem:[%s447_s3] sm:$0xff] %v224_v29  ;;  %248 = vst [vmem:[%s447_s3 + $0x40] sm:$0xff] %v232_v30  ;;  %v225_v35 = vmax.f32 %v165_v31, 0.0  ;;  %v233_v36 = vmax.f32 %v197_v32, 0.0 }
  0xe8   :  { %243 = vst [vmem:[%s447_s3 + $0x18] sm:$0xff] %v227_v33  ;;  %251 = vst [vmem:[%s447_s3 + $0x58] sm:$0xff] %v235_v34 }
  0xe9   :  { %241 = vst [vmem:[%s447_s3 + $0x8] sm:$0xff] %v225_v35  ;;  %249 = vst [vmem:[%s447_s3 + $0x48] sm:$0xff] %v233_v36  ;;  %v303_v37 = vpop.f32.mrb[4].mxu0  ;;  %v311_v38 = vpop.f32.mrb[4].mxu1 }
  0xea   :  { %v186_v39 = vadd.f32 %v303_v37, %v260_v12  ;;  %v218_v40 = vadd.f32 %v311_v38, %v260_v12  ;;  %v177_v41 = vpop.f32.mrb[5].mxu0  ;;  %v209_v42 = vpop.f32.mrb[5].mxu1 }
  0xeb   :  { %v178_v43 = vadd.f32 %v260_v12, %v177_v41  ;;  %v210_v44 = vadd.f32 %v260_v12, %v209_v42  ;;  %v304_v45 = vpop.f32.mrb[6].mxu0  ;;  %v312_v46 = vpop.f32.mrb[6].mxu1 }
  0xec   :  { %v230_v47 = vmax.f32 %v186_v39, 0.0  ;;  %v238_v48 = vmax.f32 %v218_v40, 0.0  ;;  %v189_v49 = vadd.f32 %v304_v45, %v260_v12  ;;  %v221_v50 = vadd.f32 %v312_v46, %v260_v12  ;;  %v180_v51 = vpop.f32.mrb[7].mxu0  ;;  %v212_v52 = vpop.f32.mrb[7].mxu1 }
  0xed   :  { %v228_v53 = vmax.f32 %v178_v43, 0.0  ;;  %v236_v54 = vmax.f32 %v210_v44, 0.0  ;;  %v181_v55 = vadd.f32 %v260_v12, %v180_v51  ;;  %v213_v56 = vadd.f32 %v260_v12, %v212_v52 }
  0xee   :  { %246 = vst [vmem:[%s447_s3 + $0x30] sm:$0xff] %v230_v47  ;;  %254 = vst [vmem:[%s447_s3 + $0x70] sm:$0xff] %v238_v48  ;;  %v231_v57 = vmax.f32 %v189_v49, 0.0  ;;  %v239_v58 = vmax.f32 %v221_v50, 0.0 }
  0xef   :  { %244 = vst [vmem:[%s447_s3 + $0x20] sm:$0xff] %v228_v53  ;;  %252 = vst [vmem:[%s447_s3 + $0x60] sm:$0xff] %v236_v54  ;;  %v229_v59 = vmax.f32 %v181_v55, 0.0  ;;  %v237_v60 = vmax.f32 %v213_v56, 0.0 }
  0xf0   :  { %247 = vst [vmem:[%s447_s3 + $0x38] sm:$0xff] %v231_v57  ;;  %255 = vst [vmem:[%s447_s3 + $0x78] sm:$0xff] %v239_v58 }
  0xf1   :  { %245 = vst [vmem:[%s447_s3 + $0x28] sm:$0xff] %v229_v59  ;;  %253 = vst [vmem:[%s447_s3 + $0x68] sm:$0xff] %v237_v60 }

</bundles_post_ra>
